<compile_context>
chip_gen: v5e
topology: v5e:2x2
jax: 0.10.0
libtpu: 0.0.40
codegen_flags: <defaults>
</compile_context>

<pallas_src>
import jax
import jax.numpy as jnp
from jax.experimental import pallas as pl
from jax.experimental.pallas import tpu as pltpu


def _round_up(n: int, m: int) -> int:
    return ((n + m - 1) // m) * m


def mlp_kernel(x_ref, w1_ref, b1_ref, w2_ref, b2_ref, w3_ref, b3_ref, o_ref):
    """Fused Linear/ReLU -> Linear/ReLU -> Linear/Tanh for one (batch, out) tile."""
    # Layer 1: Linear + ReLU (MXU bf16, f32 accumulation).
    h1 = jnp.dot(x_ref[...], w1_ref[...], preferred_element_type=jnp.float32)
    h1 = jnp.maximum(h1 + b1_ref[...], 0.0)

    # Layer 2: Linear + ReLU.
    h2 = jnp.dot(h1.astype(jnp.bfloat16), w2_ref[...],
                 preferred_element_type=jnp.float32)
    h2 = jnp.maximum(h2 + b2_ref[...], 0.0)

    # Layer 3 (this output tile): Linear + Tanh.
    h3 = jnp.dot(h2.astype(jnp.bfloat16), w3_ref[...],
                 preferred_element_type=jnp.float32)
    o_ref[...] = jnp.tanh(h3 + b3_ref[...]).astype(o_ref.dtype)


def music_generator_forward(x, params, out_dtype=jnp.float32):
    """y = tanh(relu(relu(x@w1+b1)@w2+b2)@w3+b3) in one fused pallas_call.

    params: (w1, b1, w2, b2, w3, b3); weights stored (in_features, out_features)
    in bf16 (matches PyTorch's x @ W.T + b), biases (1, out_features) in f32.
    """
    w1, b1, w2, b2, w3, b3 = params
    B, in_dim = x.shape
    hidden1 = w1.shape[1]
    hidden2, out_dim = w3.shape
    out_itemsize = jnp.dtype(out_dtype).itemsize

    # ---- Batch tiling: pad rows to a multiple of 16 (bf16 sublane packing),
    # cap at 256 (fills the 256x256 MXU on v6e/v7x; two MXU passes on v5e).
    tile_b = min(256, _round_up(B, 16))
    b_pad = _round_up(B, tile_b)

    # ---- Output (lane) tiling: always a multiple of 128 lanes.
    out_pad128 = _round_up(out_dim, 128)
    if hidden2 * out_pad128 * 2 <= (4 << 20):
        # Small w3: keep it essentially resident.  Split into two tiles when
        # there is only one batch tile so both v7x TensorCores have work.
        if b_pad == tile_b and out_pad128 % 256 == 0:
            tile_n = out_pad128 // 2
        else:
            tile_n = out_pad128
    else:
        # Large w3: stream it in wide, lane-dense tiles (amortizes the
        # ~0.35us/step grid overhead and keeps DMA near roofline).
        tile_n = 1024

    # ---- Compile-time VMEM budget check (conservative for v7x: 64 MiB
    # physical / 32 MiB scoped default; v5e/v6e have 128 MiB).
    def _resident_vmem(tn):
        return (2 * tile_b * in_dim * 2                              # x (dbuf, bf16)
                + 2 * (in_dim * hidden1 + hidden1 * hidden2) * 2     # w1, w2 (bf16)
                + 2 * (hidden1 + hidden2 + tn) * 4                   # biases (f32)
                + 2 * hidden2 * tn * 2                               # w3 tile (bf16)
                + 2 * tile_b * tn * out_itemsize)                    # out tile
    while tile_n > 128 and _resident_vmem(tile_n) > (24 << 20):
        tile_n = max(128, (tile_n // 2) // 128 * 128)

    out_pad = _round_up(out_dim, tile_n)

    # ---- Pad operands (padded rows/cols are sliced off after the call).
    if b_pad != B:
        x = jnp.pad(x, ((0, b_pad - B), (0, 0)))
    x = x.astype(jnp.bfloat16)
    if out_pad != out_dim:
        w3 = jnp.pad(w3, ((0, 0), (0, out_pad - out_dim)))
        b3 = jnp.pad(b3, ((0, 0), (0, out_pad - out_dim)))

    num_j = out_pad // tile_n      # output tiles  (outer grid axis)
    num_b = b_pad // tile_b        # batch tiles   (inner grid axis)
    grid = (num_j, num_b)          # j outer: each w3 tile is DMA'd from HBM once.

    flops = 2 * b_pad * (in_dim * hidden1 + hidden1 * hidden2 + hidden2 * out_pad)
    bytes_accessed = (x.size * 2
                      + (w1.size + w2.size + w3.size) * 2
                      + (b1.size + b2.size + b3.size) * 4
                      + b_pad * out_pad * out_itemsize)
    cost = pl.CostEstimate(flops=flops,
                           transcendentals=b_pad * out_pad,
                           bytes_accessed=bytes_accessed)

    out = pl.pallas_call(
        mlp_kernel,
        out_shape=jax.ShapeDtypeStruct((b_pad, out_pad), out_dtype),
        grid=grid,
        in_specs=[
            pl.BlockSpec((tile_b, in_dim), lambda j, i: (i, 0)),       # x
            pl.BlockSpec((in_dim, hidden1), lambda j, i: (0, 0)),      # w1
            pl.BlockSpec((1, hidden1), lambda j, i: (0, 0)),           # b1
            pl.BlockSpec((hidden1, hidden2), lambda j, i: (0, 0)),     # w2
            pl.BlockSpec((1, hidden2), lambda j, i: (0, 0)),           # b2
            pl.BlockSpec((hidden2, tile_n), lambda j, i: (0, j)),      # w3 (streamed)
            pl.BlockSpec((1, tile_n), lambda j, i: (0, j)),            # b3
        ],
        out_specs=pl.BlockSpec((tile_b, tile_n), lambda j, i: (i, j)),
        compiler_params=pltpu.CompilerParams(
            dimension_semantics=("parallel", "parallel")),
        cost_estimate=cost,
    )(x, w1, b1, w2, b2, w3, b3)

    return out[:B, :out_dim]


def init_params(key, input_dim, hidden_dim, output_length):
    """Deterministic init mimicking PyTorch nn.Linear (uniform +-1/sqrt(fan_in)).
    Weights stored as (in_features, out_features) bf16; biases as (1, out) f32."""
    def linear(k, fan_in, fan_out):
        kw, kb = jax.random.split(k)
        bound = 1.0 / jnp.sqrt(fan_in)
        w = jax.random.uniform(kw, (fan_in, fan_out), jnp.float32, -bound, bound)
        b = jax.random.uniform(kb, (1, fan_out), jnp.float32, -bound, bound)
        return w.astype(jnp.bfloat16), b

    k1, k2, k3 = jax.random.split(key, 3)
    w1, b1 = linear(k1, input_dim, hidden_dim)
    w2, b2 = linear(k2, hidden_dim, hidden_dim * 2)
    w3, b3 = linear(k3, hidden_dim * 2, output_length)
    return (w1, b1, w2, b2, w3, b3)


def reference_forward(x, params):
    """Pure-JAX f32 reference (bf16 params upcast) for correctness checking."""
    w1, b1, w2, b2, w3, b3 = params
    w1, w2, w3 = (w.astype(jnp.float32) for w in (w1, w2, w3))
    h = jnp.maximum(x @ w1 + b1, 0.0)
    h = jnp.maximum(h @ w2 + b2, 0.0)
    return jnp.tanh(h @ w3 + b3)


if __name__ == "__main__":
    # Small shapes consistent with the module's structure:
    #   input_dim = noise_dim + text_emb_dim, hidden_dim, hidden_dim*2, output_length
    batch = 8
    noise_dim = 16
    text_emb_dim = 112          # input_dim = 128 (lane-aligned)
    hidden_dim = 128            # hidden2 = 256
    output_length = 512

    input_dim = noise_dim + text_emb_dim

    key = jax.random.PRNGKey(0)
    k_params, k_noise, k_text = jax.random.split(key, 3)

    params = init_params(k_params, input_dim, hidden_dim, output_length)

    noise = jax.random.normal(k_noise, (batch, noise_dim), jnp.float32)
    text_emb = jax.random.normal(k_text, (batch, text_emb_dim), jnp.float32)
    x = jnp.concatenate([noise, text_emb], axis=-1)   # (batch, input_dim)

    fwd = jax.jit(music_generator_forward)
    out = jax.block_until_ready(fwd(x, params))

    ref = reference_forward(x, params)
    assert out.shape == (batch, output_length), out.shape
    # bf16 inputs/weights with f32 accumulation -> relaxed tolerance vs f32 ref.
    assert jnp.allclose(out, ref, atol=3e-2, rtol=2e-2), "mismatch vs reference"

    print("KERNEL_OK")
</pallas_src>

<mosaic_0001>
module attributes {stable_mosaic.version = 11 : i64} {
  func.func @mlp_kernel(%arg0: i32, %arg1: i32, %arg2: memref<16x128xbf16, #tpu.memory_space<vmem>>, %arg3: memref<128x128xbf16, #tpu.memory_space<vmem>>, %arg4: memref<1x128xf32, #tpu.memory_space<vmem>>, %arg5: memref<128x256xbf16, #tpu.memory_space<vmem>>, %arg6: memref<1x256xf32, #tpu.memory_space<vmem>>, %arg7: memref<256x256xbf16, #tpu.memory_space<vmem>>, %arg8: memref<1x256xf32, #tpu.memory_space<vmem>>, %arg9: memref<16x256xf32, #tpu.memory_space<vmem>>) attributes {dimension_semantics = [#tpu.dimension_semantics<parallel>, #tpu.dimension_semantics<parallel>], iteration_bounds = array<i64: 2, 1>, scalar_prefetch = 0 : i64, scratch_operands = 0 : i64, tpu.core_type = #tpu.core_type<tc>, window_params = [{transform_indices = @transform_0, window_bounds = array<i64: 16, 128>}, {pipeline_mode = #tpu.pipeline_mode<synchronous>, transform_indices = @transform_1, window_bounds = array<i64: 128, 128>}, {pipeline_mode = #tpu.pipeline_mode<synchronous>, transform_indices = @transform_2, window_bounds = array<i64: 1, 128>}, {pipeline_mode = #tpu.pipeline_mode<synchronous>, transform_indices = @transform_3, window_bounds = array<i64: 128, 256>}, {pipeline_mode = #tpu.pipeline_mode<synchronous>, transform_indices = @transform_4, window_bounds = array<i64: 1, 256>}, {transform_indices = @transform_5, window_bounds = array<i64: 256, 256>}, {transform_indices = @transform_6, window_bounds = array<i64: 1, 256>}, {transform_indices = @transform_7, window_bounds = array<i64: 16, 256>}]} {
    %c0 = arith.constant 0 : index
    %c0_0 = arith.constant 0 : index
    %0 = vector.load %arg2[%c0, %c0_0] : memref<16x128xbf16, #tpu.memory_space<vmem>>, vector<16x128xbf16>
    %c0_1 = arith.constant 0 : index
    %c0_2 = arith.constant 0 : index
    %1 = vector.load %arg3[%c0_1, %c0_2] : memref<128x128xbf16, #tpu.memory_space<vmem>>, vector<128x128xbf16>
    %cst = arith.constant dense<0.000000e+00> : vector<16x128xf32>
    %2 = tpu.matmul %0, %1, %cst {dimension_numbers = #tpu.dot_dimension_numbers<[1], [0], [0], [1], [0, 0, 1, 1], [], []>} : vector<16x128xbf16>, vector<128x128xbf16>, vector<16x128xf32> -> vector<16x128xf32>
    %c0_3 = arith.constant 0 : index
    %c0_4 = arith.constant 0 : index
    %3 = vector.load %arg4[%c0_3, %c0_4] : memref<1x128xf32, #tpu.memory_space<vmem>>, vector<1x128xf32>
    %4 = vector.broadcast %3 : vector<1x128xf32> to vector<16x128xf32>
    %5 = arith.addf %2, %4 : vector<16x128xf32>
    %cst_5 = arith.constant 0.000000e+00 : f32
    %6 = vector.broadcast %cst_5 : f32 to vector<16x128xf32>
    %7 = arith.maximumf %5, %6 : vector<16x128xf32>
    %8 = arith.truncf %7 : vector<16x128xf32> to vector<16x128xbf16>
    %c0_6 = arith.constant 0 : index
    %c0_7 = arith.constant 0 : index
    %9 = vector.load %arg5[%c0_6, %c0_7] : memref<128x256xbf16, #tpu.memory_space<vmem>>, vector<128x256xbf16>
    %cst_8 = arith.constant dense<0.000000e+00> : vector<16x256xf32>
    %10 = tpu.matmul %8, %9, %cst_8 {dimension_numbers = #tpu.dot_dimension_numbers<[1], [0], [0], [1], [0, 0, 1, 1], [], []>} : vector<16x128xbf16>, vector<128x256xbf16>, vector<16x256xf32> -> vector<16x256xf32>
    %c0_9 = arith.constant 0 : index
    %c0_10 = arith.constant 0 : index
    %11 = vector.load %arg6[%c0_9, %c0_10] : memref<1x256xf32, #tpu.memory_space<vmem>>, vector<1x256xf32>
    %12 = vector.broadcast %11 : vector<1x256xf32> to vector<16x256xf32>
    %13 = arith.addf %10, %12 : vector<16x256xf32>
    %cst_11 = arith.constant 0.000000e+00 : f32
    %14 = vector.broadcast %cst_11 : f32 to vector<16x256xf32>
    %15 = arith.maximumf %13, %14 : vector<16x256xf32>
    %16 = arith.truncf %15 : vector<16x256xf32> to vector<16x256xbf16>
    %c0_12 = arith.constant 0 : index
    %c0_13 = arith.constant 0 : index
    %17 = vector.load %arg7[%c0_12, %c0_13] : memref<256x256xbf16, #tpu.memory_space<vmem>>, vector<256x256xbf16>
    %cst_14 = arith.constant dense<0.000000e+00> : vector<16x256xf32>
    %18 = tpu.matmul %16, %17, %cst_14 {dimension_numbers = #tpu.dot_dimension_numbers<[1], [0], [0], [1], [0, 0, 1, 1], [], []>} : vector<16x256xbf16>, vector<256x256xbf16>, vector<16x256xf32> -> vector<16x256xf32>
    %c0_15 = arith.constant 0 : index
    %c0_16 = arith.constant 0 : index
    %19 = vector.load %arg8[%c0_15, %c0_16] : memref<1x256xf32, #tpu.memory_space<vmem>>, vector<1x256xf32>
    %20 = vector.broadcast %19 : vector<1x256xf32> to vector<16x256xf32>
    %21 = arith.addf %18, %20 : vector<16x256xf32>
    %22 = math.tanh %21 : vector<16x256xf32>
    %c0_17 = arith.constant 0 : index
    %c0_18 = arith.constant 0 : index
    %23 = vector.load %arg9[%c0_17, %c0_18] : memref<16x256xf32, #tpu.memory_space<vmem>>, vector<16x256xf32>
    tpu.vector_store %arg9[%c0_17, %c0_18], %22 {strides = array<i32>} : memref<16x256xf32, #tpu.memory_space<vmem>>, vector<16x256xf32>,
    return
  }
  func.func @transform_0(%arg0: i32, %arg1: i32) -> (i32, i32) {
    %c0_i32 = arith.constant 0 : i32
    %c0_i32_0 = arith.constant 0 : i32
    return %arg1, %c0_i32 : i32, i32
  }
  func.func @transform_1(%arg0: i32, %arg1: i32) -> (i32, i32) {
    %c0_i32 = arith.constant 0 : i32
    %c0_i32_0 = arith.constant 0 : i32
    %c0_i32_1 = arith.constant 0 : i32
    return %c0_i32, %c0_i32_0 : i32, i32
  }
  func.func @transform_2(%arg0: i32, %arg1: i32) -> (i32, i32) {
    %c0_i32 = arith.constant 0 : i32
    %c0_i32_0 = arith.constant 0 : i32
    %c0_i32_1 = arith.constant 0 : i32
    return %c0_i32, %c0_i32_0 : i32, i32
  }
  func.func @transform_3(%arg0: i32, %arg1: i32) -> (i32, i32) {
    %c0_i32 = arith.constant 0 : i32
    %c0_i32_0 = arith.constant 0 : i32
    %c0_i32_1 = arith.constant 0 : i32
    return %c0_i32, %c0_i32_0 : i32, i32
  }
  func.func @transform_4(%arg0: i32, %arg1: i32) -> (i32, i32) {
    %c0_i32 = arith.constant 0 : i32
    %c0_i32_0 = arith.constant 0 : i32
    %c0_i32_1 = arith.constant 0 : i32
    return %c0_i32, %c0_i32_0 : i32, i32
  }
  func.func @transform_5(%arg0: i32, %arg1: i32) -> (i32, i32) {
    %c0_i32 = arith.constant 0 : i32
    %c0_i32_0 = arith.constant 0 : i32
    return %c0_i32, %arg0 : i32, i32
  }
  func.func @transform_6(%arg0: i32, %arg1: i32) -> (i32, i32) {
    %c0_i32 = arith.constant 0 : i32
    %c0_i32_0 = arith.constant 0 : i32
    return %c0_i32, %arg0 : i32, i32
  }
  func.func @transform_7(%arg0: i32, %arg1: i32) -> (i32, i32) {
    %c0_i32 = arith.constant 0 : i32
    return %arg1, %arg0 : i32, i32
  }
}

</mosaic_0001>

<bundles_post_ra>
// kernel: music_generator_forward.1
= control target key start
LH: loop header
LB: loop body
LE: loop exit
PB: predicated region body
PF: predicated region fallthrough
CT: control target
= control target key end

     0   :  { %s1836_s0 = inlined_call_operand.vmem [shape: bf16[16,128], index: 0, kind: input, shape index: {}]   ;;  %s1837_s1 = inlined_call_operand.hbm [shape: bf16[128,128], index: 1, kind: input, shape index: {}]   ;;  %s1838_s2 = inlined_call_operand.vmem [shape: f32[1,128], index: 2, kind: input, shape index: {}]   ;;  %s1839_s3 = inlined_call_operand.hbm [shape: bf16[128,256], index: 3, kind: input, shape index: {}]   ;;  %s1840_s4 = inlined_call_operand.vmem [shape: f32[1,256], index: 4, kind: input, shape index: {}]   ;;  %s1841_s5 = inlined_call_operand.hbm [shape: bf16[256,512], index: 5, kind: input, shape index: {}]   ;;  %s1842_s6 = inlined_call_operand.vmem [shape: f32[1,512], index: 6, kind: input, shape index: {}]   ;;  %s1843_s7 = inlined_call_operand.vmem [shape: f32[16,512], index: 7, kind: output, shape index: {}]  }
   0x1   :  { %1846 = sst [smem:[#allocation13_spill]] %s1837_s1 }
   0x2   :  { %1847 = sst [smem:[#allocation14_spill]] %s1839_s3 }
   0x3   :  { %1848 = sst [smem:[#allocation15_spill]] %s1843_s7 }
   0x4   :  { %12 = vsyncpa [#allocation3], 0 }
   0x5   :  { %13 = vsyncpa [#allocation5], 0  ;;  %s1622_s24 = smov 0   ;;  %s1624_s25 = smov 0  }
   0x6   :  { %s1626_s26 = smov 0   ;;  %s1628_s27 = smov 0  }
   0x7   :  { %s1630_s28 = smov 0   ;;  %s1632_s29 = smov 0  }
   0x8 LB: > { %1849 = sst [smem:[#allocation11_spill]] %s1573_s29  ;;  %s1651_s30 = sadd.s32 4294967295, %s1573_s29   ;;  %s1573_s29 = sphi %s1632_s29, %s1866_s29   ;;  %s1569_s28 = sphi %s1630_s28, %s1865_s28   ;;  %s1565_s27 = sphi %s1628_s27, %s1864_s27   ;;  %s1561_s26 = sphi %s1626_s26, %s1863_s26   ;;  %s1557_s25 = sphi %s1624_s25, %s1862_s25   ;;  %s1553_s24 = sphi %s1622_s24, %s1861_s24  }
   0x9   : > { %p155_p0 = scmp.ne.s32.totalorder %s1561_s26, %s1557_s25  ;;  %p156_p1 = scmp.eq.s32.totalorder %s1573_s29, 0 }
   0xa   : > { %p161_p2 = scmp.ne.s32.totalorder %s1557_s25, %s1553_s24  ;;  %p162_p3 = scmp.eq.s32.totalorder %s1651_s30, 0 }
   0xb   : > { %p213_p4 = scmp.eq.s32.totalorder %s1651_s30, 1  ;;  %p1659_p5 = por %p156_p1, %p155_p0 }
   0xc   : > { %p1029_p6 = scmp.ge.s32.totalorder %s1573_s29, 1  ;;  %p1666_p7 = por %p162_p3, %p161_p2 }
   0xd   : > { %p1670_p8 = por %p213_p4, %p155_p0  ;;  %p226_p9 = scmp.lt.s32.totalorder %s1573_s29, 3 }
   0xe   : > { %s1854_s1 = sld [smem:[#allocation13_spill]]  ;;  %s1575_s15 = smov [#allocation2]  }
   0xf   : > { %s1852_s10 = scalar_select %p1670_p8, 1, 0 }
  0x10   : > { %p1678_p10 = pnand %p1029_p6, %p226_p9  ;;  %s248_s16 = sshll.u32 %s1575_s15, 4  ;;  %s249_s16 = int_to_ptr.vmem [resolvable:$true] %s248_s16 }
  0x11   : > { %1853 = sst [smem:[#allocation12_spill]] %s1852_s10  ;;  %p1358_p13 = scmp.lt.s32.totalorder %s1573_s29, 2 }
  0x12   : > { %p1345_p11 = pneg %p1678_p10  ;;  %s1856_s3 = sld [smem:[#allocation14_spill]] }
  0x13   : > { %p1692_p0 = pnand %p1358_p13, %p1659_p5  ;;  %s1576_s21 = smov 64  }
  0x14   : > { %s246_s13 = sshll.u32 %s1854_s1, 4  ;;  %p1346_p12 = pnand %p1345_p11, %p162_p3  ;;  %s247_s13 = int_to_ptr.hbm [resolvable:$true] %s246_s13 }
  0x15   : > { %s1577_s22 = smov 4   ;;  %s1578_s23 = smov [#allocation4]  }
  0x16   : > { %1348 = dma.hbm_to_vmem [thread:$0]  (!%p1346_p12), %s247_s13, 1024, %s249_s16, [#allocation3], %s1576_s21, %s1576_s21, %s1577_s22  }
  0x17   : > { %s265_s24 = sshll.u32 %s1578_s23, 4  ;;  %s1579_s11 = smov 128   ;;  %s266_s24 = int_to_ptr.vmem [resolvable:$true] %s265_s24 }
  0x18   : > { %s263_s19 = sshll.u32 %s1856_s3, 4  ;;  %s1580_s12 = smov 8   ;;  %s264_s19 = int_to_ptr.hbm [resolvable:$true] %s263_s19 }
  0x19   : > { %1351 = dma.hbm_to_vmem [thread:$0]  (!%p1346_p12), %s264_s19, 2048, %s266_s24, [#allocation5], %s1579_s11, %s1579_s11, %s1580_s12  }
  0x1a   : > { %s148_s15 = sadd.s32 1, %s1561_s26  ;;  %s282_s8 = sand.u32 1, %s1573_s29  }
  0x1b   : > { %s31_s17 = sadd.s32 1, %s1569_s28  ;;  %s284_s18 = sand.u32 1, %s1561_s26  }
  0x1c   : > { %p33_p1 = scmp.ge.s32.totalorder %s31_s17, 2  ;;  %s1034_s1 = sshll.u32 %s284_s18, 8 }
  0x1d   : > { %s1276_s3 = sshll.u32 %s1569_s28, 3  ;;  %s286_s19 = scalar_lea.vmem [#allocation6], %s1034_s1 }
  0x1e   : > { %s1868_s17 = smov (%p33_p1, %s31_s17), 0  ;;  %s291_s21 = scalar_lea.hbm %s1841_s5, %s1276_s3 }
  0x1f   : > { %s145_s22 = ssub.s32 %s1569_s28, %s1868_s17  ;;  %s292_s23 = sshll.u32 %s291_s21, 4  ;;  %s293_s23 = int_to_ptr.hbm [resolvable:$true] %s292_s23 }
  0x20   : > { %p146_p2 = scmp.eq.s32.totalorder %s145_s22, 0  ;;  %s294_s24 = sshll.u32 %s286_s19, 4  ;;  %s295_s24 = int_to_ptr.vmem [resolvable:$true] %s294_s24 }
  0x21   : > { %s283_s7 = scalar_lea.sflag [#allocation3], %s282_s8  ;;  %s1581_s10 = smov 256  }
  0x22   : > { %s1709_s29 = scalar_select %p146_p2, %s1561_s26, %s148_s15  }
  0x23   : > { %1355 = dma.hbm_to_vmem [thread:$0]  (!%p1692_p0), %s293_s23, 4096, %s295_s24, %s283_s7, %s1581_s10, %s1579_s11, %s1580_s12  }
  0x24   : > { %314 = sbr.rel (%p1678_p10) target bundleno = 524 (0x20c), region = 48 }
  0x29   : > { %1540 = dma.done.wait (%p162_p3), [#allocation3], 1024  }
  0x2a   : > { %1542 = vsyncadd (%p162_p3), [#allocation3], 4294966272 }
  0x2b   : > { %1544 = dma.done.wait (%p162_p3), [#allocation5], 2048  }
  0x2c   : > { %1546 = vsyncadd (%p162_p3), [#allocation5], 4294965248  ;;  %s326_s1 = sand.u32 1, %s1651_s30   ;;  %s328_s3 = sand.u32 1, %s1557_s25  }
  0x2d   : > { %s1040_s7 = sshll.u32 %s328_s3, 8  ;;  %s327_s10 = scalar_lea.sflag [#allocation3], %s326_s1 }
  0x2e   : > { %s1727_s14 = scalar_lea.vmem [#allocation6], %s1040_s7 }
  0x2f   : > { %1548 = dma.done.wait (%p1666_p7), %s327_s10, 4096  }
  0x30   : > { %1550 = vsyncadd (%p1666_p7), %s327_s10, 4294963200  ;;  %v1285_v0 = vld [vmem:[#allocation2 + $0x38] sm:$0xff]  ;;  %v1284_v1 = vld [vmem:[#allocation2 + $0x30] sm:$0xff]  ;;  %s1042_s8 = sshll.u32 %s1565_s27, 1  ;;  %s1041_s21 = sshll.u32 %s328_s3, 5 }
  0x31   : > { %460 = vmatpush.bf16.msra.mxu0 %v1285_v0  ;;  %v1137_v2 = vld [vmem:[#allocation4 + $0x70] sm:$0xf]  ;;  %v1301_v3 = vld [vmem:[#allocation4 + $0x74] sm:$0xf0]  ;;  %v1300_v4 = vld [vmem:[#allocation4 + $0x74] sm:$0xf] }
  0x32   : > { %v1138_v5 = vor.u32 %v1301_v3, %v1137_v2  ;;  %v1139_v6 = vld [vmem:[#allocation4 + $0x78] sm:$0xf0]  ;;  %v1129_v7 = vld [vmem:[#allocation4 + $0x60] sm:$0xf]  ;;  %v1299_v8 = vld [vmem:[#allocation4 + $0x64] sm:$0xf0] }
  0x33   : > { %v1142_v9 = vor.u32 %v1300_v4, %v1139_v6  ;;  %v1298_v10 = vld [vmem:[#allocation4 + $0x64] sm:$0xf]  ;;  %v1131_v11 = vld [vmem:[#allocation4 + $0x68] sm:$0xf0]  ;;  %v1130_v13 = vor.u32 %v1299_v8, %v1129_v7  ;;  %v1121_v15 = vld [vmem:[#allocation4 + $0x50] sm:$0xf] }
  0x34   : > { %v1283_v12 = vld [vmem:[#allocation2 + $0x28] sm:$0xff]  ;;  %579 = vmatpush.bf16.msra.mxu1 %v1138_v5  ;;  %v1134_v14 = vor.u32 %v1298_v10, %v1131_v11  ;;  %v1297_v16 = vld [vmem:[#allocation4 + $0x54] sm:$0xf0]  ;;  %v1296_v17 = vld [vmem:[#allocation4 + $0x54] sm:$0xf]  ;;  %p378_p3 = scmp.lt.s32.totalorder %s1042_s8, 3 }
  0x35   : > { %461 = vmatpush.bf16.msra.mxu0 %v1284_v1  ;;  %593 = vmatpush.bf16.msra.mxu2 %v1142_v9  ;;  %v1123_v18 = vld [vmem:[#allocation4 + $0x58] sm:$0xf0]  ;;  %v1282_v19 = vld [vmem:[#allocation2 + $0x20] sm:$0xff]  ;;  %v1122_v20 = vor.u32 %v1297_v16, %v1121_v15  ;;  %v1295_v23 = vld [vmem:[#allocation4 + $0x44] sm:$0xf0]  ;;  %s369_s22 = scalar_lea.vmem [#allocation7], %s1041_s21 }
  0x36   : > { %v1126_v21 = vor.u32 %v1296_v17, %v1123_v18  ;;  %v1113_v22 = vld [vmem:[#allocation4 + $0x40] sm:$0xf]  ;;  %v1294_v24 = vld [vmem:[#allocation4 + $0x44] sm:$0xf]  ;;  %v1115_v25 = vld [vmem:[#allocation4 + $0x48] sm:$0xf0] }
  0x37   : > { %v1281_v26 = vld [vmem:[#allocation2 + $0x18] sm:$0xff]  ;;  %v1114_v27 = vor.u32 %v1295_v23, %v1113_v22  ;;  %v1118_v28 = vor.u32 %v1294_v24, %v1115_v25  ;;  %v1280_v29 = vld [vmem:[#allocation2 + $0x10] sm:$0xff]  ;;  %v1279_v30 = vld [vmem:[#allocation2 + $0x8] sm:$0xff]  ;;  %s1870_s8 = smov (!%p378_p3, %s1042_s8), 3  ;;  %s1334_s19 = sshll.u32 (%p1670_p8), %s1565_s27, 4 }
  0x38   : > { %580 = vmatpush.bf16.msra.mxu1 %v1130_v13  ;;  %v1278_v31 = vld [vmem:[#allocation2] sm:$0xff]  ;;  %v1105_v33 = vld [vmem:[#allocation4 + $0x30] sm:$0xf]  ;;  %v1293_v34 = vld [vmem:[#allocation4 + $0x34] sm:$0xf0]  ;;  %s380_s16 = scalar_lea.vmem %s1842_s6, %s1870_s8  ;;  %s1859_s3 = sld [smem:[#allocation15_spill]] (%p1670_p8) }
  0x39   : > { %462 = vmatpush.bf16.msra.mxu0 %v1283_v12  ;;  %594 = vmatpush.bf16.msra.mxu2 %v1134_v14  ;;  %v1277_v32 = vld [vmem:[%s1836_s0] sm:$0xff]  ;;  %v1292_v35 = vld [vmem:[#allocation4 + $0x34] sm:$0xf]  ;;  %v1106_v36 = vor.u32 %v1293_v34, %v1105_v33  ;;  %v1107_v37 = vld [vmem:[#allocation4 + $0x38] sm:$0xf0] }
  0x3a   : > { %v1110_v38 = vor.u32 %v1292_v35, %v1107_v37  ;;  %v1097_v39 = vld [vmem:[#allocation4 + $0x20] sm:$0xf]  ;;  %v1291_v40 = vld [vmem:[#allocation4 + $0x24] sm:$0xf0]  ;;  %v1290_v41 = vld [vmem:[#allocation4 + $0x24] sm:$0xf] }
  0x3b   : > { %v1098_v42 = vor.u32 %v1291_v40, %v1097_v39  ;;  %v1099_v43 = vld [vmem:[#allocation4 + $0x28] sm:$0xf0]  ;;  %v1089_v45 = vld [vmem:[#allocation4 + $0x10] sm:$0xf]  ;;  %v1289_v46 = vld [vmem:[#allocation4 + $0x14] sm:$0xf0] }
  0x3c   : > { %581 = vmatpush.bf16.msra.mxu1 %v1122_v20  ;;  %v1102_v44 = vor.u32 %v1290_v41, %v1099_v43  ;;  %v1288_v47 = vld [vmem:[#allocation4 + $0x14] sm:$0xf]  ;;  %v1090_v48 = vor.u32 %v1289_v46, %v1089_v45  ;;  %v1091_v49 = vld [vmem:[#allocation4 + $0x18] sm:$0xf0]  ;;  %v1081_v51 = vld [vmem:[#allocation4] sm:$0xf] }
  0x3d   : > { %463 = vmatpush.bf16.msra.mxu0 %v1282_v19  ;;  %595 = vmatpush.bf16.msra.mxu2 %v1126_v21  ;;  %v1094_v50 = vor.u32 %v1288_v47, %v1091_v49  ;;  %v1287_v52 = vld [vmem:[#allocation4 + $0x4] sm:$0xf0]  ;;  %v1286_v53 = vld [vmem:[#allocation4 + $0x4] sm:$0xf]  ;;  %v1083_v55 = vld [vmem:[#allocation4 + $0x8] sm:$0xf0] }
  0x3e   : > { %v1082_v54 = vor.u32 %v1287_v52, %v1081_v51  ;;  %v1086_v56 = vor.u32 %v1286_v53, %v1083_v55  ;;  %v1201_v57 = vld [vmem:[%s1727_s14 + $0x70] sm:$0xf]  ;;  %v1317_v58 = vld [vmem:[%s1727_s14 + $0x74] sm:$0xf0]  ;;  %v1316_v59 = vld [vmem:[%s1727_s14 + $0x74] sm:$0xf]  ;;  %s887_s7 = scalar_lea.vmem (%p1670_p8), %s1859_s3, %s1334_s19 }
  0x3f   : > { %v1202_v60 = vor.u32 %v1317_v58, %v1201_v57  ;;  %v1203_v61 = vld [vmem:[%s1727_s14 + $0x78] sm:$0xf0]  ;;  %v1193_v62 = vld [vmem:[%s1727_s14 + $0x60] sm:$0xf]  ;;  %v1315_v63 = vld [vmem:[%s1727_s14 + $0x64] sm:$0xf0] }
  0x40   : > { %582 = vmatpush.bf16.msra.mxu1 %v1114_v27  ;;  %v1206_v0 = vor.u32 %v1316_v59, %v1203_v61  ;;  %v1314_v1 = vld [vmem:[%s1727_s14 + $0x64] sm:$0xf]  ;;  %v1195_v2 = vld [vmem:[%s1727_s14 + $0x68] sm:$0xf0]  ;;  %v1265_v3 = vld [vmem:[%s1727_s14 + $0xf0] sm:$0xf]  ;;  %v1194_v4 = vor.u32 %v1315_v63, %v1193_v62 }
  0x41   : > { %464 = vmatpush.bf16.msra.mxu0 %v1281_v26  ;;  %596 = vmatpush.bf16.msra.mxu2 %v1118_v28  ;;  %v1333_v5 = vld [vmem:[%s1727_s14 + $0xf4] sm:$0xf0]  ;;  %v1332_v6 = vld [vmem:[%s1727_s14 + $0xf4] sm:$0xf]  ;;  %v1267_v7 = vld [vmem:[%s1727_s14 + $0xf8] sm:$0xf0]  ;;  %v1198_v8 = vor.u32 %v1314_v1, %v1195_v2 }
  0x42   : > { %811 = vmatpush.bf16.msra.mxu3 %v1202_v60  ;;  %v1266_v9 = vor.u32 %v1333_v5, %v1265_v3  ;;  %v1270_v10 = vor.u32 %v1332_v6, %v1267_v7  ;;  %v1185_v11 = vld [vmem:[%s1727_s14 + $0x50] sm:$0xf]  ;;  %v1313_v12 = vld [vmem:[%s1727_s14 + $0x54] sm:$0xf0]  ;;  %v1312_v13 = vld [vmem:[%s1727_s14 + $0x54] sm:$0xf] }
  0x43   : > { %v1187_v14 = vld [vmem:[%s1727_s14 + $0x58] sm:$0xf0]  ;;  %v1257_v15 = vld [vmem:[%s1727_s14 + $0xe0] sm:$0xf]  ;;  %v1331_v16 = vld [vmem:[%s1727_s14 + $0xe4] sm:$0xf0]  ;;  %v1186_v20 = vor.u32 %v1313_v12, %v1185_v11 }
  0x44   : > { %583 = vmatpush.bf16.msra.mxu1 %v1106_v36  ;;  %v1258_v17 = vor.u32 %v1331_v16, %v1257_v15  ;;  %v1330_v18 = vld [vmem:[%s1727_s14 + $0xe4] sm:$0xf]  ;;  %v1259_v19 = vld [vmem:[%s1727_s14 + $0xe8] sm:$0xf0]  ;;  %v1177_v22 = vld [vmem:[%s1727_s14 + $0x40] sm:$0xf]  ;;  %v1190_v24 = vor.u32 %v1312_v13, %v1187_v14 }
  0x45   : > { %465 = vmatpush.bf16.msra.mxu0 %v1280_v29  ;;  %597 = vmatpush.bf16.msra.mxu2 %v1110_v38  ;;  %v1262_v21 = vor.u32 %v1330_v18, %v1259_v19  ;;  %v1311_v23 = vld [vmem:[%s1727_s14 + $0x44] sm:$0xf0]  ;;  %v1249_v25 = vld [vmem:[%s1727_s14 + $0xd0] sm:$0xf]  ;;  %v1329_v26 = vld [vmem:[%s1727_s14 + $0xd4] sm:$0xf0] }
  0x46   : > { %812 = vmatpush.bf16.msra.mxu3 %v1194_v4  ;;  %v1328_v27 = vld [vmem:[%s1727_s14 + $0xd4] sm:$0xf]  ;;  %v1310_v28 = vld [vmem:[%s1727_s14 + $0x44] sm:$0xf]  ;;  %v1179_v29 = vld [vmem:[%s1727_s14 + $0x48] sm:$0xf0]  ;;  %v1178_v33 = vor.u32 %v1311_v23, %v1177_v22 }
  0x47   : > { %v1182_v34 = vor.u32 %v1310_v28, %v1179_v29  ;;  %v1416_v36 = vld [vmem:[%s1838_s2] ss:$0 sm:$0xff]  ;;  %v1169_v43 = vld [vmem:[%s1727_s14 + $0x30] sm:$0xf]  ;;  %v1308_v45 = vld [vmem:[%s1727_s14 + $0x34] sm:$0xf] }
  0x48   : > { %584 = vmatpush.bf16.msra.mxu1 %v1098_v42  ;;  %v1171_v47 = vld [vmem:[%s1727_s14 + $0x38] sm:$0xf0]  ;;  %v1241_v49 = vld [vmem:[%s1727_s14 + $0xc0] sm:$0xf]  ;;  %v1326_v51 = vld [vmem:[%s1727_s14 + $0xc4] sm:$0xf] }
  0x49   : > { %466 = vmatpush.bf16.msra.mxu0 %v1279_v30  ;;  %598 = vmatpush.bf16.msra.mxu2 %v1102_v44  ;;  %v1251_v30 = vld [vmem:[%s1727_s14 + $0xd8] sm:$0xf0]  ;;  %v1309_v44 = vld [vmem:[%s1727_s14 + $0x34] sm:$0xf0]  ;;  %v1243_v53 = vld [vmem:[%s1727_s14 + $0xc8] sm:$0xf0] }
  0x4a   : > { %813 = vmatpush.bf16.msra.mxu3 %v1186_v20  ;;  %v1170_v46 = vor.u32 %v1309_v44, %v1169_v43  ;;  %v1161_v55 = vld [vmem:[%s1727_s14 + $0x20] sm:$0xf]  ;;  %v1306_v57 = vld [vmem:[%s1727_s14 + $0x24] sm:$0xf]  ;;  %v1163_v59 = vld [vmem:[%s1727_s14 + $0x28] sm:$0xf0] }
  0x4b   : > { %v1166_v60 = vor.u32 %v1306_v57, %v1163_v59  ;;  %v1233_v61 = vld [vmem:[%s1727_s14 + $0xb0] sm:$0xf]  ;;  %v1325_v62 = vld [vmem:[%s1727_s14 + $0xb4] sm:$0xf0]  ;;  %v1235_v1 = vld [vmem:[%s1727_s14 + $0xb8] sm:$0xf0] }
  0x4c   : > { %585 = vmatpush.bf16.msra.mxu1 %v1090_v48  ;;  %v1174_v48 = vor.u32 %v1308_v45, %v1171_v47  ;;  %v1234_v63 = vor.u32 %v1325_v62, %v1233_v61  ;;  %v1153_v3 = vld [vmem:[%s1727_s14 + $0x10] sm:$0xf]  ;;  %v1305_v4 = vld [vmem:[%s1727_s14 + $0x14] sm:$0xf0]  ;;  %v1304_v5 = vld [vmem:[%s1727_s14 + $0x14] sm:$0xf] }
  0x4d   : > { %467 = vmatpush.bf16.msra.mxu0 %v1278_v31  ;;  %599 = vmatpush.bf16.msra.mxu2 %v1094_v50  ;;  %v1250_v31 = vor.u32 %v1329_v26, %v1249_v25  ;;  %v1327_v50 = vld [vmem:[%s1727_s14 + $0xc4] sm:$0xf0]  ;;  %v1154_v6 = vor.u32 %v1305_v4, %v1153_v3  ;;  %v1155_v7 = vld [vmem:[%s1727_s14 + $0x18] sm:$0xf0]  ;;  %v1322_v11 = vld [vmem:[%s1727_s14 + $0xa4] sm:$0xf] }
  0x4e   : > { %814 = vmatpush.bf16.msra.mxu3 %v1178_v33  ;;  %v1242_v52 = vor.u32 %v1327_v50, %v1241_v49  ;;  %v1227_v13 = vld [vmem:[%s1727_s14 + $0xa8] sm:$0xf0]  ;;  %v1145_v15 = vld [vmem:[%s1727_s14] sm:$0xf]  ;;  %v1303_v16 = vld [vmem:[%s1727_s14 + $0x4] sm:$0xf0] }
  0x4f   : > { %v1230_v14 = vor.u32 %v1322_v11, %v1227_v13  ;;  %v1146_v18 = vor.u32 %v1303_v16, %v1145_v15  ;;  %v1147_v19 = vld [vmem:[%s1727_s14 + $0x8] sm:$0xf0]  ;;  %v1321_v22 = vld [vmem:[%s1727_s14 + $0x94] sm:$0xf0]  ;;  %v1320_v23 = vld [vmem:[%s1727_s14 + $0x94] sm:$0xf] }
  0x50   : > { %468 = vmatmul.bf16.vlgmr.msra.gmra.mxu0 %v1277_v32  ;;  %586 = vmatpush.bf16.msra.mxu1 %v1082_v54  ;;  %v1254_v32 = vor.u32 %v1328_v27, %v1251_v30  ;;  %v1246_v54 = vor.u32 %v1326_v51, %v1243_v53  ;;  %v1219_v25 = vld [vmem:[%s1727_s14 + $0x98] sm:$0xf0]  ;;  %v1209_v27 = vld [vmem:[%s1727_s14 + $0x80] sm:$0xf]  ;;  %v1319_v28 = vld [vmem:[%s1727_s14 + $0x84] sm:$0xf0] }
  0x51   : > { %600 = vmatpush.bf16.msra.mxu2 %v1086_v56  ;;  %825 = vmatpush.bf16.msrb.mxu0 %v1266_v9  ;;  %v1307_v56 = vld [vmem:[%s1727_s14 + $0x24] sm:$0xf0]  ;;  %v1225_v9 = vld [vmem:[%s1727_s14 + $0xa0] sm:$0xf]  ;;  %v1222_v26 = vor.u32 %v1320_v23, %v1219_v25  ;;  %v1318_v29 = vld [vmem:[%s1727_s14 + $0x84] sm:$0xf]  ;;  %v1210_v30 = vor.u32 %v1319_v28, %v1209_v27 }
  0x52   : > { %815 = vmatpush.bf16.msra.mxu3 %v1170_v46  ;;  %v1162_v58 = vor.u32 %v1307_v56, %v1161_v55  ;;  %v493_v33 = vld [vmem:[%s1840_s4] sm:$0x3] }
  0x53   : > { %v645_v50 = vld [vmem:[%s380_s16] sm:$0x3] }
  0x54   : > { %839 = vmatpush.bf16.msrb.mxu1 %v1206_v0  ;;  %v1324_v0 = vld [vmem:[%s1727_s14 + $0xb4] sm:$0xf]  ;;  %v647_v51 = vperm.slane %v645_v50, 0  ;;  %v648_v55 = vperm.slane %v645_v50, 1 }
  0x55   : > { %853 = vmatpush.bf16.msrb.mxu2 %v1270_v10  ;;  %826 = vmatpush.bf16.msrb.mxu0 %v1258_v17  ;;  %v1238_v2 = vor.u32 %v1324_v0, %v1235_v1  ;;  %v1323_v10 = vld [vmem:[%s1727_s14 + $0xa4] sm:$0xf0]  ;;  %v1302_v17 = vld [vmem:[%s1727_s14 + $0x4] sm:$0xf] }
  0x56   : > { %816 = vmatpush.bf16.msra.mxu3 %v1162_v58  ;;  %v1226_v12 = vor.u32 %v1323_v10, %v1225_v9  ;;  %v1150_v20 = vor.u32 %v1302_v17, %v1147_v19 }
  0x58   : > { %840 = vmatpush.bf16.msrb.mxu1 %v1198_v8  ;;  %v1158_v8 = vor.u32 %v1304_v5, %v1155_v7 }
  0x59   : > { %854 = vmatpush.bf16.msrb.mxu2 %v1262_v21  ;;  %827 = vmatpush.bf16.msrb.mxu0 %v1250_v31  ;;  %v1217_v21 = vld [vmem:[%s1727_s14 + $0x90] sm:$0xf]  ;;  %v1211_v31 = vld [vmem:[%s1727_s14 + $0x88] sm:$0xf0] }
  0x5a   : > { %817 = vmatpush.bf16.msra.mxu3 %v1154_v6 }
  0x5c   : > { %841 = vmatpush.bf16.msrb.mxu1 %v1190_v24  ;;  %v1218_v24 = vor.u32 %v1321_v22, %v1217_v21 }
  0x5d   : > { %855 = vmatpush.bf16.msrb.mxu2 %v1254_v32  ;;  %828 = vmatpush.bf16.msrb.mxu0 %v1242_v52  ;;  %v1214_v32 = vor.u32 %v1318_v29, %v1211_v31 }
  0x5e   : > { %818 = vmatpush.bf16.msra.mxu3 %v1146_v18 }
  0x60   : > { %842 = vmatpush.bf16.msrb.mxu1 %v1182_v34 }
  0x61   : > { %856 = vmatpush.bf16.msrb.mxu2 %v1246_v54  ;;  %829 = vmatpush.bf16.msrb.mxu0 %v1234_v63 }
  0x64   : > { %843 = vmatpush.bf16.msrb.mxu1 %v1174_v48 }
  0x65   : > { %857 = vmatpush.bf16.msrb.mxu2 %v1238_v2  ;;  %830 = vmatpush.bf16.msrb.mxu0 %v1226_v12 }
  0x68   : > { %844 = vmatpush.bf16.msrb.mxu1 %v1166_v60 }
  0x69   : > { %858 = vmatpush.bf16.msrb.mxu2 %v1230_v14  ;;  %831 = vmatpush.bf16.msrb.mxu0 %v1218_v24 }
  0x6c   : > { %845 = vmatpush.bf16.msrb.mxu1 %v1158_v8 }
  0x6d   : > { %859 = vmatpush.bf16.msrb.mxu2 %v1222_v26  ;;  %832 = vmatpush.bf16.msrb.mxu0 %v1210_v30 }
  0x70   : > { %846 = vmatpush.bf16.msrb.mxu1 %v1150_v20 }
  0x71   : > { %860 = vmatpush.bf16.msrb.mxu2 %v1214_v32 }
  0xcd   : > { %v469_v35 = vpop.f32.mrf.mxu0 }
  0xce   : > { %v470_v37 = vadd.f32 %v1416_v36, %v469_v35  ;;  %v495_v35 = vperm.slane %v493_v33, 0 }
  0xd0   : > { %v474_v40 = vmax.f32 %v470_v37, 0.0 }
  0xd5   : > { %v471_v38 = vpop.f32.mrf.mxu0 }
  0xd6   : > { %v472_v39 = vadd.f32 %v1416_v36, %v471_v38 }
  0xd8   : > { %v475_v41 = vmax.f32 %v472_v39, 0.0  ;;  %v496_v39 = vperm.slane %v493_v33, 1 }
  0xda   : > { %v476_v42 = vpack.c.bf16 %v475_v41, %v474_v40 }
  0xdc   : > { %587 = vmatmul.bf16.vlgmr.msra.gmra.mxu1 %v476_v42  ;;  %601 = vmatmul.bf16.vlgmr.msra.gmra.mxu2 %v476_v42 }
 0x159   : > { %v588_v34 = vpop.f32.mrf.mxu1 }
 0x15a   : > { %v589_v37 = vadd.f32 %v588_v34, %v495_v35 }
 0x15c   : > { %v607_v41 = vmax.f32 %v589_v37, 0.0 }
 0x15f   : > { %v602_v36 = vpop.f32.mrf.mxu2 }
 0x160   : > { %v603_v43 = vadd.f32 %v602_v36, %v496_v39 }
 0x161   : > { %v590_v38 = vpop.f32.mrf.mxu1 }
 0x162   : > { %v591_v40 = vadd.f32 %v590_v38, %v495_v35  ;;  %v608_v47 = vmax.f32 %v603_v43, 0.0 }
 0x164   : > { %v609_v42 = vmax.f32 %v591_v40, 0.0 }
 0x166   : > { %v611_v44 = vpack.c.bf16 %v609_v42, %v607_v41 }
 0x167   : > { %v604_v45 = vpop.f32.mrf.mxu2 }
 0x168   : > { %v605_v46 = vadd.f32 %v604_v45, %v496_v39  ;;  %819 = vmatmul.bf16.vlgmr.msra.gmra.mxu3 %v611_v44  ;;  %847 = vmatmul.bf16.vlgmr.msrb.gmra.mxu1 %v611_v44 }
 0x16a   : > { %v610_v48 = vmax.f32 %v605_v46, 0.0 }
 0x16c   : > { %v612_v49 = vpack.c.bf16 %v610_v48, %v608_v47 }
 0x16e   : > { %833 = vmatmul.bf16.vlgmr.msrb.gmra.mxu0 %v612_v49  ;;  %861 = vmatmul.bf16.vlgmr.msrb.gmra.mxu2 %v612_v49 }
 0x1e5   : > { %v848_v52 = vpop.f32.mrf.mxu1 }
 0x1e6   : > { %v849_v58 = vadd.f32 %v848_v52, %v648_v55 }
 0x1eb   : > { %v820_v53 = vpop.f32.mrf.mxu3  ;;  %v834_v54 = vpop.f32.mrf.mxu0 }
 0x1ec   : > { %v821_v56 = vadd.f32 %v820_v53, %v647_v51 }
 0x1ed   : > { %v850_v63 = vpop.f32.mrf.mxu1 }
 0x1ee   : > { %v835_v57 = vadd.f32 %v834_v54, %v821_v56  ;;  %v851_v3 = vadd.f32 %v850_v63, %v648_v55 }
 0x1f0   : > { %1417 = vtanh.f32 %v835_v57 }
 0x1f1   : > { %v862_v59 = vpop.f32.mrf.mxu2 }
 0x1f2   : > { %v863_v60 = vadd.f32 %v862_v59, %v849_v58 }
 0x1f3   : > { %v822_v61 = vpop.f32.mrf.mxu3  ;;  %v836_v0 = vpop.f32.mrf.mxu0 }
 0x1f4   : > { %1419 = vtanh.f32 %v863_v60  ;;  %v823_v62 = vadd.f32 %v822_v61, %v647_v51 }
 0x1f6   : > { %v1418_v1 = vpop.eup %1417  ;;  %v837_v2 = vadd.f32 %v836_v0, %v823_v62 }
 0x1f7   : > { %871 = vst [vmem:[%s369_s22] sm:$0xff] %v1418_v1 }
 0x1f8   : > { %1421 = vtanh.f32 %v837_v2 }
 0x1f9   : > { %v864_v4 = vpop.f32.mrf.mxu2 }
 0x1fa   : > { %v1420_v5 = vpop.eup %1419  ;;  %v865_v6 = vadd.f32 %v864_v4, %v851_v3 }
 0x1fb   : > { %872 = vst [vmem:[%s369_s22 + $0x8] sm:$0xff] %v1420_v5 }
 0x1fc   : > { %1423 = vtanh.f32 %v865_v6 }
 0x1fe   : > { %v1422_v7 = vpop.eup %1421  ;;  %v900_v9 = vld [vmem:[%s369_s22] sm:$0xff] (%p1670_p8) }
 0x1ff   : > { %873 = vst [vmem:[%s369_s22 + $0x10] sm:$0xff] %v1422_v7  ;;  %881 = sbr.rel (!%p1670_p8) target bundleno = 524 (0x20c), region = 64 }
 0x200   : > { %901 = vst [vmem:[%s887_s7] sm:$0xff] (%p1670_p8), %v900_v9 }
 0x202   : > { %v1424_v8 = vpop.eup %1423  ;;  %v902_v10 = vld [vmem:[%s369_s22 + $0x8] sm:$0xff] (%p1670_p8) }
 0x203   : > { %874 = vst [vmem:[%s369_s22 + $0x18] sm:$0xff] %v1424_v8 }
 0x204   : > { %903 = vst [vmem:[%s887_s7 + $0x8] sm:$0xff] %v902_v10 }
 0x206   : > { %v904_v11 = vld [vmem:[%s369_s22 + $0x10] sm:$0xff] }
 0x207   : > { %905 = vst [vmem:[%s887_s7 + $0x20] sm:$0xff] %v904_v11 }
 0x20a   : > { %v906_v12 = vld [vmem:[%s369_s22 + $0x18] sm:$0xff] }
 0x20b   : > { %907 = vst [vmem:[%s887_s7 + $0x28] sm:$0xff] %v906_v12 }
 0x20c PF: > { %s1860_s10 = sld [smem:[#allocation11_spill]]  ;;  %s1861_s24 = smov %s1557_s25 }
 0x20d   : > { %s1862_s25 = smov %s1561_s26  ;;  %s1863_s26 = smov %s1709_s29 }
 0x20e   : > { %s1864_s27 = smov %s1569_s28  ;;  %s1865_s28 = smov %s1868_s17 }
 0x212   : > { %s19_s14 = sadd.s32 1, %s1860_s10  }
 0x213   : > { %p16_p4 = scmp.ge.s32.totalorder %s19_s14, 4   ;;  %s1866_s29 = smov %s19_s14 }
 0x215   :  { %18 = sbr.rel (!%p16_p4) target bundleno = 8 (0x8), region = 124 }
 0x21a   :  { %923 = vsyncpa [#allocation3], 1 }
 0x21b   :  { %925 = vsyncpa [#allocation3 + $0x1], 1 }
 0x21c   :  { %926 = vsyncpa [#allocation5], 1 }

</bundles_post_ra>
